<compile_context>
chip_gen: v7x
topology: tpu7x:2x2x1
jax: 0.10.0
libtpu: 0.0.40
codegen_flags: <defaults>
</compile_context>

<pallas_src>
import functools

import jax
import jax.numpy as jnp
from jax.experimental import pallas as pl
from jax.experimental.pallas import tpu as pltpu


def _logitnorm_rowloss_kernel(x_ref, tgt_ref, loss_ref, *, t, fixed_shift):
    """Per-row cross-entropy of the logit-normalized tile.

    x_ref:    (TN, C) input logits (any float dtype)
    tgt_ref:  (TN, 1) int32 class indices
    loss_ref: (TN, 1) f32 per-row NLL
    """
    x = x_ref[...].astype(jnp.float32)                          # (TN, C)
    tgt = tgt_ref[...]                                          # (TN, 1) int32

    # First pass over x: squared norm and target-class select, fused.
    ss = jnp.sum(x * x, axis=-1, keepdims=True)                 # (TN, 1)
    col = jax.lax.broadcasted_iota(jnp.int32, x.shape, 1)       # (TN, C)
    x_tgt = jnp.sum(jnp.where(col == tgt, x, 0.0), axis=-1, keepdims=True)

    # Temperature folded into one per-row scale: z = x * inv, z_tgt = x_tgt * inv.
    inv = 1.0 / ((jnp.sqrt(ss) + 1e-7) * t)                     # (TN, 1), exact
    z = x * inv                                                 # (TN, C)

    if fixed_shift:
        # |z_i| = |x_i| / ((||x|| + eps) * t) <= 1/t, so a constant shift is a
        # valid stable-LSE offset; saves one cross-lane XLU reduction pass.
        m = jnp.float32(1.0 / t)
        lse = jnp.log(jnp.sum(jnp.exp(z - m), axis=-1, keepdims=True)) + m
    else:
        # Tiny-temperature fallback (exp(-2/t) would underflow in f32).
        m = jnp.max(z, axis=-1, keepdims=True)
        lse = jnp.log(jnp.sum(jnp.exp(z - m), axis=-1, keepdims=True)) + m

    loss_ref[...] = lse - x_tgt * inv                           # (TN, 1)


def _sublane(itemsize):
    # Sublane packing multiple for the input dtype.
    return 32 if itemsize == 1 else (16 if itemsize == 2 else 8)


def _round_up(v, m):
    return ((v + m - 1) // m) * m


def _pick_block_rows(n, c, itemsize):
    sub = _sublane(itemsize)
    c_pad = _round_up(max(c, 1), 128)            # lane padding when C < 128
    # ~2 MiB of lane-padded f32 working tile; sized purely by bytes, no row cap.
    rows = max(sub, ((2 * 1024 * 1024) // (c_pad * 4) // sub) * sub)
    # Force >= ~4 tiles for big problems: engages v7x's second TensorCore via
    # the "parallel" grid axis and restores DMA/compute overlap.
    if n * c_pad * 4 > 2 * 1024 * 1024:
        rows = min(rows, max(sub, _round_up(pl.cdiv(n, 4), sub)))
    # TODO(synk): for vocab-scale C (>~256K) add a class-dim grid axis with an
    # online log-sum-exp instead of degenerating to 8-row tiles.
    return n if rows >= n else rows


def logitnorm_loss(x, target, t=1.0, block_rows=None):
    """x: (N, C) float array, target: (N,) int class indices -> scalar f32 loss."""
    n, c = x.shape
    tgt = target.astype(jnp.int32).reshape(n, 1)
    itemsize = x.dtype.itemsize
    sub = _sublane(itemsize)

    if block_rows is None:
        block_rows = _pick_block_rows(n, c, itemsize)
    block_rows = min(int(block_rows), n)
    if block_rows < n:
        block_rows = max(sub, (block_rows // sub) * sub)   # dtype-aware sublane align

    grid = (pl.cdiv(n, block_rows),)
    # Constant-shift LSE is safe iff exp(-2/t) stays a normal f32 number.
    fixed_shift = (2.0 / float(t)) < 80.0

    per_row = pl.pallas_call(
        functools.partial(_logitnorm_rowloss_kernel,
                          t=float(t), fixed_shift=fixed_shift),
        out_shape=jax.ShapeDtypeStruct((n, 1), jnp.float32),
        grid=grid,
        in_specs=[
            pl.BlockSpec((block_rows, c), lambda i: (i, 0)),
            # TODO(synk): the (TN, 1) int32 target tile is lane-padded in VMEM;
            # an SMEM scalar-prefetch path would reclaim that at extra complexity.
            pl.BlockSpec((block_rows, 1), lambda i: (i, 0)),
        ],
        out_specs=pl.BlockSpec((block_rows, 1), lambda i: (i, 0)),
        compiler_params=pltpu.CompilerParams(
            dimension_semantics=("parallel",),   # independent tiles -> 2 TCs on v7x
            vmem_limit_bytes=32 * 1024 * 1024,
        ),
    )(x, tgt)

    # Mean over the TRUE batch size (padded tail rows never reach HBM).
    return jnp.sum(per_row) / jnp.float32(n)


def _reference_loss(x, target, t=1.0):
    x = x.astype(jnp.float32)
    norms = jnp.sqrt(jnp.sum(x * x, axis=-1, keepdims=True)) + 1e-7
    z = (x / norms) / t
    logp = jax.nn.log_softmax(z, axis=-1)
    nll = -jnp.take_along_axis(logp, target[:, None].astype(jnp.int32), axis=-1)
    return jnp.mean(nll)


if __name__ == "__main__":
    root = jax.random.PRNGKey(0)

    def _check(seed_idx, n, c, t, dtype, block_rows=None, tol=1e-5):
        kx, kt = jax.random.split(jax.random.fold_in(root, seed_idx))
        x = jax.random.normal(kx, (n, c), dtype=jnp.float32).astype(dtype)
        tgt = jax.random.randint(kt, (n,), 0, c, dtype=jnp.int32)
        got = jax.block_until_ready(logitnorm_loss(x, tgt, t=t, block_rows=block_rows))
        ref = jax.block_until_ready(_reference_loss(x, tgt, t=t))
        assert jnp.allclose(got, ref, rtol=tol, atol=tol), (n, c, t, str(dtype), got, ref)

    # Small single-tile case (matches the original module-scale check).
    _check(0, 8, 32, 1.0, jnp.float32)
    # Multi-tile grid + typical LogitNorm temperature (constant-shift LSE path).
    _check(1, 48, 64, 0.07, jnp.float32, block_rows=16, tol=2e-5)
    # Ragged last tile (40 rows, 16-row tiles) exercises boundary handling.
    _check(2, 40, 64, 1.0, jnp.float32, block_rows=16)
    # Native bf16 input kept in HBM, cast to f32 inside the kernel.
    _check(3, 32, 128, 1.0, jnp.bfloat16, block_rows=16, tol=1e-4)
    # Tiny temperature falls back to the per-row max shift.
    _check(4, 16, 32, 0.01, jnp.float32, tol=2e-5)
    # Auto-sized tiling on a bigger problem: byte-sized tiles, >= 4 grid steps.
    _check(5, 4096, 256, 1.0, jnp.float32)

    print("KERNEL_OK")
</pallas_src>

<mosaic_0001>
module attributes {stable_mosaic.version = 11 : i64} {
  func.func @_logitnorm_rowloss_kernel(%arg0: i32, %arg1: memref<8x32xf32, #tpu.memory_space<vmem>>, %arg2: memref<8x1xi32, #tpu.memory_space<vmem>>, %arg3: memref<8x1xf32, #tpu.memory_space<vmem>>) attributes {dimension_semantics = [#tpu.dimension_semantics<parallel>], iteration_bounds = array<i64: 1>, scalar_prefetch = 0 : i64, scratch_operands = 0 : i64, tpu.core_type = #tpu.core_type<tc>, window_params = [{transform_indices = @transform_0, window_bounds = array<i64: 8, 32>}, {transform_indices = @transform_1, window_bounds = array<i64: 8, 1>}, {transform_indices = @transform_2, window_bounds = array<i64: 8, 1>}]} {
    %c0 = arith.constant 0 : index
    %c0_0 = arith.constant 0 : index
    %0 = vector.load %arg1[%c0, %c0_0] : memref<8x32xf32, #tpu.memory_space<vmem>>, vector<8x32xf32>
    %c0_1 = arith.constant 0 : index
    %c0_2 = arith.constant 0 : index
    %1 = vector.load %arg2[%c0_1, %c0_2] : memref<8x1xi32, #tpu.memory_space<vmem>>, vector<8x1xi32>
    %2 = arith.mulf %0, %0 : vector<8x32xf32>
    %cst = arith.constant dense<0.000000e+00> : vector<8xf32>
    %3 = vector.multi_reduction <add>, %2, %cst [1] : vector<8x32xf32> to vector<8xf32>
    %4 = vector.shape_cast %3 : vector<8xf32> to vector<8x1xf32>
    %5 = tpu.iota {dimensions = array<i32: 1>} : vector<8x32xi32>
    %6 = vector.broadcast %1 : vector<8x1xi32> to vector<8x32xi32>
    %7 = arith.cmpi eq, %5, %6 : vector<8x32xi32>
    %cst_3 = arith.constant 0.000000e+00 : f32
    %8 = vector.broadcast %cst_3 : f32 to vector<8x32xf32>
    %9 = arith.select %7, %0, %8 : vector<8x32xi1>, vector<8x32xf32>
    %cst_4 = arith.constant dense<0.000000e+00> : vector<8xf32>
    %10 = vector.multi_reduction <add>, %9, %cst_4 [1] : vector<8x32xf32> to vector<8xf32>
    %11 = vector.shape_cast %10 : vector<8xf32> to vector<8x1xf32>
    %12 = math.sqrt %4 : vector<8x1xf32>
    %cst_5 = arith.constant 1.000000e-07 : f32
    %13 = vector.broadcast %cst_5 : f32 to vector<8x1xf32>
    %14 = arith.addf %12, %13 : vector<8x1xf32>
    %cst_6 = arith.constant 1.000000e+00 : f32
    %15 = vector.broadcast %cst_6 : f32 to vector<8x1xf32>
    %16 = arith.mulf %14, %15 : vector<8x1xf32>
    %cst_7 = arith.constant 1.000000e+00 : f32
    %17 = vector.broadcast %cst_7 : f32 to vector<8x1xf32>
    %18 = arith.divf %17, %16 : vector<8x1xf32>
    %19 = vector.broadcast %18 : vector<8x1xf32> to vector<8x32xf32>
    %20 = arith.mulf %0, %19 : vector<8x32xf32>
    %cst_8 = arith.constant 1.000000e+00 : f32
    %21 = vector.broadcast %cst_8 : f32 to vector<8x32xf32>
    %22 = arith.subf %20, %21 : vector<8x32xf32>
    %23 = math.exp %22 : vector<8x32xf32>
    %cst_9 = arith.constant dense<0.000000e+00> : vector<8xf32>
    %24 = vector.multi_reduction <add>, %23, %cst_9 [1] : vector<8x32xf32> to vector<8xf32>
    %25 = vector.shape_cast %24 : vector<8xf32> to vector<8x1xf32>
    %26 = math.log %25 : vector<8x1xf32>
    %cst_10 = arith.constant 1.000000e+00 : f32
    %27 = vector.broadcast %cst_10 : f32 to vector<8x1xf32>
    %28 = arith.addf %26, %27 : vector<8x1xf32>
    %29 = arith.mulf %11, %18 : vector<8x1xf32>
    %30 = arith.subf %28, %29 : vector<8x1xf32>
    %c0_11 = arith.constant 0 : index
    %c0_12 = arith.constant 0 : index
    %31 = vector.load %arg3[%c0_11, %c0_12] : memref<8x1xf32, #tpu.memory_space<vmem>>, vector<8x1xf32>
    tpu.vector_store %arg3[%c0_11, %c0_12], %30 {strides = array<i32>} : memref<8x1xf32, #tpu.memory_space<vmem>>, vector<8x1xf32>,
    return
  }
  func.func @transform_0(%arg0: i32) -> (i32, i32) {
    %c0_i32 = arith.constant 0 : i32
    %c0_i32_0 = arith.constant 0 : i32
    return %arg0, %c0_i32 : i32, i32
  }
  func.func @transform_1(%arg0: i32) -> (i32, i32) {
    %c0_i32 = arith.constant 0 : i32
    %c0_i32_0 = arith.constant 0 : i32
    return %arg0, %c0_i32 : i32, i32
  }
  func.func @transform_2(%arg0: i32) -> (i32, i32) {
    %c0_i32 = arith.constant 0 : i32
    %c0_i32_0 = arith.constant 0 : i32
    return %arg0, %c0_i32 : i32, i32
  }
}

</mosaic_0001>

<bundles_post_ra>
// kernel: tpu_custom_call.1
= control target key start
LH: loop header
LB: loop body
LE: loop exit
PB: predicated region body
PF: predicated region fallthrough
CT: control target
= control target key end

     0   :  { %vm14_vm0 = vcmask 261120   ;;  %v67_v1 = vmov 0   ;;  %v18_v16 = vlaneseq  ;;  %vm50_vm4 = vcmask 7168   ;;  %s95_s0 = inlined_call_operand.vmem [shape: f32[8,32], index: 0, kind: input, shape index: {}]   ;;  %s96_s1 = inlined_call_operand.vmem [shape: s32[8,1], index: 1, kind: input, shape index: {}]   ;;  %s97_s2 = inlined_call_operand.vmem [shape: f32[8,1], index: 2, kind: output, shape index: {}]  }
   0x1   :  { %v11_v0 = vld [vmem:[%s95_s0] sm:$0xff]  ;;  %58 = vset.pattern.permute.xlu0 %v67_v1 }
   0x2   :  { %v13_v2 = vmul.f32 %v11_v0, %v11_v0  ;;  %v12_v4 = vld [vmem:[%s96_s1] sm:$0xff]  ;;  %v19_v17 = vand.u32 127, %v18_v16 }
   0x4   :  { %v15_v3 = vsel %vm14_vm0, %v13_v2, 0.0 }
   0x5   :  { %16 = vadd.xlane.f32.xlu0 %v15_v3 }
  0x1b   :  { %21 = vperm.xlu0 %58, %v12_v4  }
  0x92   :  { %v17_v5 = vpop.xlane.xlu0 %16 }
  0x93   :  { %59 = vrsqrt.f32 %v17_v5  ;;  %vm30_vm1 = vcmp.eq.f32.partialorder %v17_v5, inf  ;;  %v33_v8 = vand.u32 2147483648, %v17_v5  ;;  %vm32_vm2 = vcmp.eq.f32.partialorder %v17_v5, 0.0 }
  0x9a   :  { %v22_v18 = vpop.permute.xlu0 %21 }
  0x9b   :  { %vm23_vm3 = vcmp.eq.s32.totalorder %v19_v17, %v22_v18 }
  0x9c   :  { %v24_v20 = vsel %vm23_vm3, %v11_v0, 0.0 }
  0x9d   :  { %v60_v6 = vpop.eup %59  ;;  %v25_v22 = vsel %vm14_vm0, %v24_v20, 0.0 }
  0x9e   :  { %v29_v7 = vmul.f32 %v60_v6, %v17_v5 }
  0xa0   :  { %v31_v9 = vsel %vm30_vm1, %v17_v5, %v29_v7 }
  0xa1   :  { %v34_v10 = vsel %vm32_vm2, %v33_v8, %v31_v9 }
  0xa2   :  { %v35_v11 = vadd.f32 1e-07, %v34_v10 }
  0xa4   :  { %61 = vrcp.f32 %v35_v11 }
  0xae   :  { %v62_v12 = vpop.eup %61 }
  0xaf   :  { %v38_v13 = vmul.f32 %v62_v12, %v11_v0 }
  0xb1   :  { %v56_v14 = vadd.f32 -1.0, %v38_v13 }
  0xb3   :  { %v40_v15 = vmul.f32 1.442695, %v56_v14 }
  0xb5   :  { %63 = vpow2.f32 %v40_v15 }
  0xbf   :  { %v64_v19 = vpop.eup %63 }
  0xc0   :  { %v42_v21 = vsel %vm14_vm0, %v64_v19, 0.0 }
  0xc1   :  { %43 = vadd.xlane.f32.xlu1 %v42_v21 }
  0xc5   :  { %26 = vadd.xlane.f32.xlu1 %v25_v22 }
 0x14e   :  { %v44_v23 = vpop.xlane.xlu1 %43 }
 0x14f   :  { %65 = vlog2.f32 %v44_v23 }
 0x152   :  { %v27_v25 = vpop.xlane.xlu1 %26 }
 0x153   :  { %v48_v28 = vmul.f32 %v62_v12, %v27_v25 }
 0x159   :  { %v66_v24 = vpop.eup %65 }
 0x15a   :  { %v46_v26 = vmul.f32 0.6931472, %v66_v24 }
 0x15c   :  { %v47_v27 = vadd.f32 1.0, %v46_v26 }
 0x15e   :  { %v49_v29 = vsub.f32 %v47_v27, %v48_v28 }
 0x160   :  { %51 = vst.msk [vmem:[%s97_s2] sm:$0xff] %vm50_vm4, %v49_v29 }

</bundles_post_ra>
